<compile_context>
chip_gen: v6e
topology: v6e:2x2x1
jax: 0.10.0
libtpu: 0.0.40
codegen_flags: <defaults>
</compile_context>

<pallas_src>
import jax
import jax.numpy as jnp
from jax.experimental import pallas as pl
from jax.experimental.pallas import tpu as pltpu

IN_F = 784     # input features  (nn.Linear(784, 256))
HID_F = 256    # hidden features
OUT_F = 10     # output features (nn.Linear(256, 10))
OUT_P = 128    # lane-padded output width (10 -> 128) for unmasked stores


def _round_up(x, m):
    return ((x + m - 1) // m) * m


def _pick_tm(batch, num_cores=2):
    """Batch tile height: sublane-aligned, MXU-filling, megacore-friendly."""
    bp = _round_up(batch, 8)
    if bp <= 256:
        return bp                      # whole batch in one tile, minimal padding
    # Large batches: 256-1024 row tiles; aim for >= 2 grid steps per core so
    # the "parallel" batch axis can actually shard across v7x's 2 TensorCores.
    tm = max(256, min(1024, _round_up(bp // (2 * num_cores), 8)))
    return tm


def mlp_kernel(x_ref, w1t_ref, b1_ref, w2t_ref, b2_ref, o_ref):
    x = x_ref[...]                                            # (TM, 784)
    # hidden = relu(x @ W1.T + b1)   -- f32 accumulation, f32 bias add
    h = jnp.dot(x, w1t_ref[...], preferred_element_type=jnp.float32)
    h = jnp.maximum(h + b1_ref[...], 0.0)                     # (TM, 256) f32
    # out = h @ W2.T + b2            -- W2 columns zero-padded to 128 lanes
    y = jnp.dot(h.astype(w2t_ref.dtype), w2t_ref[...],
                preferred_element_type=jnp.float32)
    o_ref[...] = (y + b2_ref[...]).astype(o_ref.dtype)        # (TM, 128)


def prepare_params(w1, b1, w2, b2, param_dtype=jnp.float32):
    """One-time parameter prep (hoisted out of the per-call path).

    w1: (256, 784), b1: (256,), w2: (10, 256), b2: (10,)  [PyTorch (out,in)].
    Returns (w1t, b1r, w2t_p, b2r_p) ready for mlp_forward.
    """
    w1t = jnp.asarray(w1).T.astype(param_dtype)               # (784, 256)
    w2t_p = jnp.zeros((HID_F, OUT_P), param_dtype)
    w2t_p = w2t_p.at[:, :OUT_F].set(jnp.asarray(w2).T.astype(param_dtype))
    b1r = jnp.asarray(b1, jnp.float32).reshape(1, HID_F)
    b2r_p = jnp.zeros((1, OUT_P), jnp.float32)
    b2r_p = b2r_p.at[:, :OUT_F].set(jnp.asarray(b2, jnp.float32))
    return w1t, b1r, w2t_p, b2r_p


def mlp_forward(x, w1t, b1r, w2t_p, b2r_p, *, tm=None):
    """x: (B, 784).  Prepared params from prepare_params().  Returns (B, 10) f32."""
    B = x.shape[0]
    if tm is None:
        tm = _pick_tm(B)
    Bp = _round_up(B, tm)

    x = x.astype(w1t.dtype)                                   # f32 or bf16 path
    if Bp != B:
        x = jnp.pad(x, ((0, Bp - B), (0, 0)))

    out = pl.pallas_call(
        mlp_kernel,
        out_shape=jax.ShapeDtypeStruct((Bp, OUT_P), jnp.float32),
        grid_spec=pltpu.PrefetchScalarGridSpec(
            num_scalar_prefetch=0,
            grid=(Bp // tm,),
            in_specs=[
                pl.BlockSpec((tm, IN_F), lambda i: (i, 0)),      # x rows (streamed)
                pl.BlockSpec((IN_F, HID_F), lambda i: (0, 0)),   # W1.T (resident)
                pl.BlockSpec((1, HID_F), lambda i: (0, 0)),      # b1   (resident)
                pl.BlockSpec((HID_F, OUT_P), lambda i: (0, 0)),  # W2.T padded (resident)
                pl.BlockSpec((1, OUT_P), lambda i: (0, 0)),      # b2 padded  (resident)
            ],
            out_specs=pl.BlockSpec((tm, OUT_P), lambda i: (i, 0)),
        ),
        compiler_params=pltpu.CompilerParams(
            dimension_semantics=("parallel",)),   # megacore-shard batch on v7x
    )(x, w1t, b1r, w2t_p, b2r_p)

    return out[:B, :OUT_F]


if __name__ == "__main__":
    key = jax.random.PRNGKey(0)
    k_x, k_w1, k_b1, k_w2, k_b2 = jax.random.split(key, 5)

    # PyTorch-style uniform init: U(-1/sqrt(fan_in), 1/sqrt(fan_in))
    bnd1 = 1.0 / (IN_F ** 0.5)
    bnd2 = 1.0 / (HID_F ** 0.5)
    w1 = jax.random.uniform(k_w1, (HID_F, IN_F), minval=-bnd1, maxval=bnd1,
                            dtype=jnp.float32)
    b1 = jax.random.uniform(k_b1, (HID_F,), minval=-bnd1, maxval=bnd1,
                            dtype=jnp.float32)
    w2 = jax.random.uniform(k_w2, (OUT_F, HID_F), minval=-bnd2, maxval=bnd2,
                            dtype=jnp.float32)
    b2 = jax.random.uniform(k_b2, (OUT_F,), minval=-bnd2, maxval=bnd2,
                            dtype=jnp.float32)

    def ref_fwd(x):
        return jnp.maximum(x @ w1.T + b1, 0.0) @ w2.T + b2

    # --- f32 path, tiny batch (B=2, pads to one 8-row tile) -----------------
    B = 2
    x = jax.random.normal(k_x, (B, IN_F), dtype=jnp.float32)
    p_f32 = prepare_params(w1, b1, w2, b2, jnp.float32)
    y = jax.block_until_ready(mlp_forward(x, *p_f32))
    assert y.shape == (B, OUT_F)
    assert jnp.allclose(y, ref_fwd(x), rtol=1e-5, atol=1e-5), "f32 mismatch"

    # --- f32 path, multi-step grid (resident weights across grid steps) -----
    B2 = 20
    x2 = jax.random.normal(k_x, (B2, IN_F), dtype=jnp.float32)
    y2 = jax.block_until_ready(mlp_forward(x2, *p_f32, tm=8))   # grid = 3 steps
    assert jnp.allclose(y2, ref_fwd(x2), rtol=1e-5, atol=1e-5), "grid mismatch"

    # --- optional bf16 operand path (f32 accumulation) -----------------------
    p_bf16 = prepare_params(w1, b1, w2, b2, jnp.bfloat16)
    y_bf = jax.block_until_ready(mlp_forward(x, *p_bf16))
    assert jnp.allclose(y_bf, ref_fwd(x), rtol=5e-2, atol=5e-2), "bf16 mismatch"

    print("KERNEL_OK")
</pallas_src>

<mosaic_0001>
module attributes {stable_mosaic.version = 11 : i64} {
  func.func @mlp_kernel(%arg0: i32, %arg1: memref<8x784xf32, #tpu.memory_space<vmem>>, %arg2: memref<784x256xf32, #tpu.memory_space<vmem>>, %arg3: memref<1x256xf32, #tpu.memory_space<vmem>>, %arg4: memref<256x128xf32, #tpu.memory_space<vmem>>, %arg5: memref<1x128xf32, #tpu.memory_space<vmem>>, %arg6: memref<8x128xf32, #tpu.memory_space<vmem>>) attributes {dimension_semantics = [#tpu.dimension_semantics<parallel>], iteration_bounds = array<i64: 1>, scalar_prefetch = 0 : i64, scratch_operands = 0 : i64, tpu.core_type = #tpu.core_type<tc>, window_params = [{transform_indices = @transform_0, window_bounds = array<i64: 8, 784>}, {pipeline_mode = #tpu.pipeline_mode<synchronous>, transform_indices = @transform_1, window_bounds = array<i64: 784, 256>}, {pipeline_mode = #tpu.pipeline_mode<synchronous>, transform_indices = @transform_2, window_bounds = array<i64: 1, 256>}, {pipeline_mode = #tpu.pipeline_mode<synchronous>, transform_indices = @transform_3, window_bounds = array<i64: 256, 128>}, {pipeline_mode = #tpu.pipeline_mode<synchronous>, transform_indices = @transform_4, window_bounds = array<i64: 1, 128>}, {transform_indices = @transform_5, window_bounds = array<i64: 8, 128>}]} {
    %c0 = arith.constant 0 : index
    %c0_0 = arith.constant 0 : index
    %0 = vector.load %arg1[%c0, %c0_0] : memref<8x784xf32, #tpu.memory_space<vmem>>, vector<8x784xf32>
    %c0_1 = arith.constant 0 : index
    %c0_2 = arith.constant 0 : index
    %1 = vector.load %arg2[%c0_1, %c0_2] : memref<784x256xf32, #tpu.memory_space<vmem>>, vector<784x256xf32>
    %cst = arith.constant dense<0.000000e+00> : vector<8x256xf32>
    %2 = tpu.matmul %0, %1, %cst {dimension_numbers = #tpu.dot_dimension_numbers<[1], [0], [0], [1], [0, 0, 1, 1], [], []>} : vector<8x784xf32>, vector<784x256xf32>, vector<8x256xf32> -> vector<8x256xf32>
    %c0_3 = arith.constant 0 : index
    %c0_4 = arith.constant 0 : index
    %3 = vector.load %arg3[%c0_3, %c0_4] : memref<1x256xf32, #tpu.memory_space<vmem>>, vector<1x256xf32>
    %4 = vector.broadcast %3 : vector<1x256xf32> to vector<8x256xf32>
    %5 = arith.addf %2, %4 : vector<8x256xf32>
    %cst_5 = arith.constant 0.000000e+00 : f32
    %6 = vector.broadcast %cst_5 : f32 to vector<8x256xf32>
    %7 = arith.maximumf %5, %6 : vector<8x256xf32>
    %c0_6 = arith.constant 0 : index
    %c0_7 = arith.constant 0 : index
    %8 = vector.load %arg4[%c0_6, %c0_7] : memref<256x128xf32, #tpu.memory_space<vmem>>, vector<256x128xf32>
    %cst_8 = arith.constant dense<0.000000e+00> : vector<8x128xf32>
    %9 = tpu.matmul %7, %8, %cst_8 {dimension_numbers = #tpu.dot_dimension_numbers<[1], [0], [0], [1], [0, 0, 1, 1], [], []>} : vector<8x256xf32>, vector<256x128xf32>, vector<8x128xf32> -> vector<8x128xf32>
    %c0_9 = arith.constant 0 : index
    %c0_10 = arith.constant 0 : index
    %10 = vector.load %arg5[%c0_9, %c0_10] : memref<1x128xf32, #tpu.memory_space<vmem>>, vector<1x128xf32>
    %11 = vector.broadcast %10 : vector<1x128xf32> to vector<8x128xf32>
    %12 = arith.addf %9, %11 : vector<8x128xf32>
    %c0_11 = arith.constant 0 : index
    %c0_12 = arith.constant 0 : index
    %13 = vector.load %arg6[%c0_11, %c0_12] : memref<8x128xf32, #tpu.memory_space<vmem>>, vector<8x128xf32>
    tpu.vector_store %arg6[%c0_11, %c0_12], %12 {strides = array<i32>} : memref<8x128xf32, #tpu.memory_space<vmem>>, vector<8x128xf32>,
    return
  }
  func.func @transform_0(%arg0: i32) -> (i32, i32) {
    %c0_i32 = arith.constant 0 : i32
    %c0_i32_0 = arith.constant 0 : i32
    return %arg0, %c0_i32 : i32, i32
  }
  func.func @transform_1(%arg0: i32) -> (i32, i32) {
    %c0_i32 = arith.constant 0 : i32
    %c0_i32_0 = arith.constant 0 : i32
    %c0_i32_1 = arith.constant 0 : i32
    return %c0_i32, %c0_i32_0 : i32, i32
  }
  func.func @transform_2(%arg0: i32) -> (i32, i32) {
    %c0_i32 = arith.constant 0 : i32
    %c0_i32_0 = arith.constant 0 : i32
    %c0_i32_1 = arith.constant 0 : i32
    return %c0_i32, %c0_i32_0 : i32, i32
  }
  func.func @transform_3(%arg0: i32) -> (i32, i32) {
    %c0_i32 = arith.constant 0 : i32
    %c0_i32_0 = arith.constant 0 : i32
    %c0_i32_1 = arith.constant 0 : i32
    return %c0_i32, %c0_i32_0 : i32, i32
  }
  func.func @transform_4(%arg0: i32) -> (i32, i32) {
    %c0_i32 = arith.constant 0 : i32
    %c0_i32_0 = arith.constant 0 : i32
    %c0_i32_1 = arith.constant 0 : i32
    return %c0_i32, %c0_i32_0 : i32, i32
  }
  func.func @transform_5(%arg0: i32) -> (i32, i32) {
    %c0_i32 = arith.constant 0 : i32
    %c0_i32_0 = arith.constant 0 : i32
    return %arg0, %c0_i32 : i32, i32
  }
}

</mosaic_0001>

<bundles_post_ra>
// kernel: tpu_custom_call.1
= control target key start
LH: loop header
LB: loop body
LE: loop exit
PB: predicated region body
PF: predicated region fallthrough
CT: control target
= control target key end

     0   :  { %10 = vsyncpa [#allocation3], 0  ;;  %s880_s0 = inlined_call_operand.hbm [shape: f32[8,784], index: 0, kind: input, shape index: {}]   ;;  %s881_s1 = inlined_call_operand.hbm [shape: f32[784,256], index: 1, kind: input, shape index: {}]   ;;  %s882_s2 = inlined_call_operand.vmem [shape: f32[1,256], index: 2, kind: input, shape index: {}]   ;;  %s883_s3 = inlined_call_operand.hbm [shape: f32[256,128], index: 3, kind: input, shape index: {}]   ;;  %s884_s4 = inlined_call_operand.vmem [shape: f32[1,128], index: 4, kind: input, shape index: {}]   ;;  %s885_s5 = inlined_call_operand.hbm [shape: f32[8,128], index: 5, kind: output, shape index: {}]  }
   0x1   :  { %11 = vsyncpa [#allocation6], 0 }
   0x2   :  { %12 = vsyncpa [#allocation4], 0  ;;  %s823_s18 = smov [#allocation5]  }
   0x3   :  { %s28_s19 = sshll.u32 %s823_s18, 4  ;;  %s29_s19 = int_to_ptr.vmem [resolvable:$true] %s28_s19 }
   0x4   :  { %s745_s20 = scalar_lea.vmem %s29_s19, 25088  ;;  %p750_p1 = scmp.lt.s32.totalorder %s29_s19, %s29_s19 }
   0x5   :  { %p746_p0 = scmp.ne.s32.totalorder %s29_s19, %s745_s20  ;;  %p751_p2 = scmp.lt.s32.totalorder %s745_s20, %s745_s20 }
   0x7   :  { %p752_p3 = por %p751_p2, %p750_p1 }
   0x9   :  { %p753_p4 = pnand %p752_p3, %p746_p0 }
   0xb   :  { %756 = shalt.err (!%p753_p4)
}
   0xc   :  { %s824_s21 = smov 256   ;;  %s825_s22 = smov 16  }
   0xd   :  { %34 = dma.hbm_to_vmem [thread:$0]  %s881_s1, 25088, %s29_s19, [#allocation6], %s824_s21, %s824_s21, %s825_s22  }
   0xe   :  { %s826_s25 = smov [#allocation2]   ;;  %s827_s27 = smov [#allocation7]  }
   0xf   :  { %s19_s26 = sshll.u32 %s826_s25, 4  ;;  %s42_s28 = sshll.u32 %s827_s27, 4  ;;  %s20_s26 = int_to_ptr.vmem [resolvable:$true] %s19_s26  ;;  %s43_s28 = int_to_ptr.vmem [resolvable:$true] %s42_s28 }
  0x10   :  { %s765_s29 = scalar_lea.vmem %s20_s26, 896  ;;  %p770_p6 = scmp.lt.s32.totalorder %s20_s26, %s20_s26 }
  0x11   :  { %p766_p5 = scmp.ne.s32.totalorder %s20_s26, %s765_s29  ;;  %p771_p7 = scmp.lt.s32.totalorder %s765_s29, %s765_s29 }
  0x13   :  { %p772_p8 = por %p771_p7, %p770_p6 }
  0x15   :  { %p773_p9 = pnand %p772_p8, %p766_p5 }
  0x17   :  { %776 = shalt.err (!%p773_p9)
}
  0x18   :  { %22 = dma.hbm_to_vmem [thread:$0]  %s880_s0, 896, %s20_s26, [#allocation3]  }
  0x19   :  { %s785_s7 = scalar_lea.vmem %s43_s28, 4096  ;;  %p790_p11 = scmp.lt.s32.totalorder %s43_s28, %s43_s28 }
  0x1a   :  { %p786_p10 = scmp.ne.s32.totalorder %s43_s28, %s785_s7  ;;  %p791_p12 = scmp.lt.s32.totalorder %s785_s7, %s785_s7 }
  0x1c   :  { %p792_p13 = por %p791_p12, %p790_p11 }
  0x1e   :  { %p793_p0 = pnand %p792_p13, %p786_p10 }
  0x20   :  { %796 = shalt.err (!%p793_p0)
}
  0x21   :  { %s828_s1 = smov 128   ;;  %s829_s8 = smov 8  }
  0x22   :  { %48 = dma.hbm_to_vmem [thread:$0]  %s883_s3, 4096, %s43_s28, [#allocation6], %s828_s1, %s828_s1, %s829_s8  }
  0x23   :  { %817 = dma.done.wait [#allocation3], 896  }
  0x24   :  { %818 = vsyncadd [#allocation3], 4294966400 }
  0x25   :  { %819 = dma.done.wait [#allocation6], 29184  }
  0x26   :  { %820 = vsyncadd [#allocation6], 4294938112  ;;  %v98_v0 = vld [vmem:[#allocation5 + $0xf8] sm:$0xff]  ;;  %v97_v1 = vld [vmem:[#allocation5 + $0xf0] sm:$0xff]  ;;  %vm275_vm0 = vcmask 130048   ;;  %s831_s12 = smov [#allocation8]  }
  0x27   :  { %v96_v2 = vld [vmem:[#allocation5 + $0xe8] sm:$0xff]  ;;  %279 = vmatprep.subr.mxu0 %v98_v0  ;;  %v162_v3 = vld [vmem:[#allocation5 + $0x2f8] sm:$0xff]  ;;  %v95_v4 = vld [vmem:[#allocation5 + $0xe0] sm:$0xff]  ;;  %s681_s13 = sshll.u32 %s831_s12, 4  ;;  %s682_s13 = int_to_ptr.vmem [resolvable:$true] %s681_s13 }
  0x28   :  { %v161_v5 = vld [vmem:[#allocation5 + $0x2f0] sm:$0xff]  ;;  %280 = vmatpush1.msra.mxu0 %v97_v1  ;;  %350 = vmatprep.subr.mxu1 %v162_v3  ;;  %v94_v6 = vld [vmem:[#allocation5 + $0xd8] sm:$0xff]  ;;  %v160_v7 = vld [vmem:[#allocation5 + $0x2e8] sm:$0xff]  ;;  %s797_s14 = scalar_lea.vmem %s682_s13, 128  ;;  %p802_p2 = scmp.lt.s32.totalorder %s682_s13, %s682_s13 }
  0x29   :  { %281 = vmatprep.subr.mxu0 %v96_v2  ;;  %351 = vmatpush1.msra.mxu1 %v161_v5  ;;  %v93_v8 = vld [vmem:[#allocation5 + $0xd0] sm:$0xff]  ;;  %v159_v9 = vld [vmem:[#allocation5 + $0x2e0] sm:$0xff]  ;;  %v158_v10 = vld [vmem:[#allocation5 + $0x2d8] sm:$0xff]  ;;  %p798_p1 = scmp.ne.s32.totalorder %s682_s13, %s797_s14  ;;  %p803_p3 = scmp.lt.s32.totalorder %s797_s14, %s797_s14 }
  0x2a   :  { %282 = vmatpush1.msra.mxu0 %v95_v4  ;;  %352 = vmatprep.subr.mxu1 %v160_v7  ;;  %v92_v11 = vld [vmem:[#allocation5 + $0xc8] sm:$0xff]  ;;  %v157_v12 = vld [vmem:[#allocation5 + $0x2d0] sm:$0xff]  ;;  %v91_v13 = vld [vmem:[#allocation5 + $0xc0] sm:$0xff] }
  0x2b   :  { %283 = vmatprep.subr.mxu0 %v94_v6  ;;  %353 = vmatpush1.msra.mxu1 %v159_v9  ;;  %v156_v14 = vld [vmem:[#allocation5 + $0x2c8] sm:$0xff]  ;;  %v90_v15 = vld [vmem:[#allocation5 + $0xb8] sm:$0xff]  ;;  %v155_v16 = vld [vmem:[#allocation5 + $0x2c0] sm:$0xff]  ;;  %p804_p4 = por %p803_p3, %p802_p2 }
  0x2c   :  { %284 = vmatpush1.msra.mxu0 %v93_v8  ;;  %354 = vmatprep.subr.mxu1 %v158_v10  ;;  %v89_v17 = vld [vmem:[#allocation5 + $0xb0] sm:$0xff]  ;;  %v154_v18 = vld [vmem:[#allocation5 + $0x2b8] sm:$0xff]  ;;  %v88_v19 = vld [vmem:[#allocation5 + $0xa8] sm:$0xff] }
  0x2d   :  { %285 = vmatprep.subr.mxu0 %v92_v11  ;;  %355 = vmatpush1.msra.mxu1 %v157_v12  ;;  %v153_v20 = vld [vmem:[#allocation5 + $0x2b0] sm:$0xff]  ;;  %v87_v21 = vld [vmem:[#allocation5 + $0xa0] sm:$0xff]  ;;  %v152_v22 = vld [vmem:[#allocation5 + $0x2a8] sm:$0xff]  ;;  %p805_p5 = pnand %p804_p4, %p798_p1 }
  0x2e   :  { %286 = vmatpush1.msra.mxu0 %v91_v13  ;;  %356 = vmatprep.subr.mxu1 %v156_v14  ;;  %v86_v23 = vld [vmem:[#allocation5 + $0x98] sm:$0xff]  ;;  %v151_v24 = vld [vmem:[#allocation5 + $0x2a0] sm:$0xff]  ;;  %v85_v25 = vld [vmem:[#allocation5 + $0x90] sm:$0xff] }
  0x2f   :  { %287 = vmatprep.subr.mxu0 %v90_v15  ;;  %357 = vmatpush1.msra.mxu1 %v155_v16  ;;  %v150_v26 = vld [vmem:[#allocation5 + $0x298] sm:$0xff]  ;;  %v84_v27 = vld [vmem:[#allocation5 + $0x88] sm:$0xff]  ;;  %v149_v28 = vld [vmem:[#allocation5 + $0x290] sm:$0xff] }
  0x30   :  { %288 = vmatpush1.msra.mxu0 %v89_v17  ;;  %358 = vmatprep.subr.mxu1 %v154_v18  ;;  %v83_v29 = vld [vmem:[#allocation5 + $0x80] sm:$0xff]  ;;  %v148_v30 = vld [vmem:[#allocation5 + $0x288] sm:$0xff]  ;;  %v82_v31 = vld [vmem:[#allocation5 + $0x78] sm:$0xff] }
  0x31   :  { %289 = vmatprep.subr.mxu0 %v88_v19  ;;  %359 = vmatpush1.msra.mxu1 %v153_v20  ;;  %v147_v32 = vld [vmem:[#allocation5 + $0x280] sm:$0xff]  ;;  %v81_v33 = vld [vmem:[#allocation5 + $0x70] sm:$0xff]  ;;  %v146_v34 = vld [vmem:[#allocation5 + $0x278] sm:$0xff] }
  0x32   :  { %290 = vmatpush1.msra.mxu0 %v87_v21  ;;  %360 = vmatprep.subr.mxu1 %v152_v22  ;;  %v80_v35 = vld [vmem:[#allocation5 + $0x68] sm:$0xff]  ;;  %v145_v36 = vld [vmem:[#allocation5 + $0x270] sm:$0xff]  ;;  %v79_v37 = vld [vmem:[#allocation5 + $0x60] sm:$0xff] }
  0x33   :  { %291 = vmatprep.subr.mxu0 %v86_v23  ;;  %361 = vmatpush1.msra.mxu1 %v151_v24  ;;  %v144_v38 = vld [vmem:[#allocation5 + $0x268] sm:$0xff]  ;;  %v78_v39 = vld [vmem:[#allocation5 + $0x58] sm:$0xff]  ;;  %v143_v40 = vld [vmem:[#allocation5 + $0x260] sm:$0xff] }
  0x34   :  { %292 = vmatpush1.msra.mxu0 %v85_v25  ;;  %362 = vmatprep.subr.mxu1 %v150_v26  ;;  %v77_v41 = vld [vmem:[#allocation5 + $0x50] sm:$0xff]  ;;  %v142_v42 = vld [vmem:[#allocation5 + $0x258] sm:$0xff]  ;;  %v76_v43 = vld [vmem:[#allocation5 + $0x48] sm:$0xff] }
  0x35   :  { %293 = vmatprep.subr.mxu0 %v84_v27  ;;  %363 = vmatpush1.msra.mxu1 %v149_v28  ;;  %v141_v44 = vld [vmem:[#allocation5 + $0x250] sm:$0xff]  ;;  %v75_v45 = vld [vmem:[#allocation5 + $0x40] sm:$0xff]  ;;  %v140_v46 = vld [vmem:[#allocation5 + $0x248] sm:$0xff] }
  0x36   :  { %294 = vmatpush1.msra.mxu0 %v83_v29  ;;  %364 = vmatprep.subr.mxu1 %v148_v30  ;;  %v74_v47 = vld [vmem:[#allocation5 + $0x38] sm:$0xff]  ;;  %v139_v48 = vld [vmem:[#allocation5 + $0x240] sm:$0xff]  ;;  %v73_v49 = vld [vmem:[#allocation5 + $0x30] sm:$0xff] }
  0x37   :  { %295 = vmatprep.subr.mxu0 %v82_v31  ;;  %365 = vmatpush1.msra.mxu1 %v147_v32  ;;  %v138_v50 = vld [vmem:[#allocation5 + $0x238] sm:$0xff]  ;;  %v72_v51 = vld [vmem:[#allocation5 + $0x28] sm:$0xff]  ;;  %v137_v52 = vld [vmem:[#allocation5 + $0x230] sm:$0xff] }
  0x38   :  { %296 = vmatpush1.msra.mxu0 %v81_v33  ;;  %366 = vmatprep.subr.mxu1 %v146_v34  ;;  %v71_v53 = vld [vmem:[#allocation5 + $0x20] sm:$0xff]  ;;  %v136_v54 = vld [vmem:[#allocation5 + $0x228] sm:$0xff]  ;;  %v70_v55 = vld [vmem:[#allocation5 + $0x18] sm:$0xff] }
  0x39   :  { %297 = vmatprep.subr.mxu0 %v80_v35  ;;  %367 = vmatpush1.msra.mxu1 %v145_v36  ;;  %v135_v56 = vld [vmem:[#allocation5 + $0x220] sm:$0xff]  ;;  %v69_v57 = vld [vmem:[#allocation5 + $0x10] sm:$0xff]  ;;  %v134_v58 = vld [vmem:[#allocation5 + $0x218] sm:$0xff] }
  0x3a   :  { %298 = vmatpush1.msra.mxu0 %v79_v37  ;;  %368 = vmatprep.subr.mxu1 %v144_v38  ;;  %v68_v59 = vld [vmem:[#allocation5 + $0x8] sm:$0xff]  ;;  %v133_v60 = vld [vmem:[#allocation5 + $0x210] sm:$0xff]  ;;  %v67_v61 = vld [vmem:[#allocation5] sm:$0xff] }
  0x3b   :  { %299 = vmatprep.subr.mxu0 %v78_v39  ;;  %369 = vmatpush1.msra.mxu1 %v143_v40  ;;  %v132_v62 = vld [vmem:[#allocation5 + $0x208] sm:$0xff]  ;;  %v130_v63 = vld [vmem:[#allocation5 + $0x1f8] sm:$0xff]  ;;  %v131_v0 = vld [vmem:[#allocation5 + $0x200] sm:$0xff] }
  0x3c   :  { %300 = vmatpush1.msra.mxu0 %v77_v41  ;;  %370 = vmatprep.subr.mxu1 %v142_v42  ;;  %v129_v1 = vld [vmem:[#allocation5 + $0x1f0] sm:$0xff]  ;;  %v194_v2 = vld [vmem:[#allocation5 + $0x3f8] sm:$0xff]  ;;  %v128_v3 = vld [vmem:[#allocation5 + $0x1e8] sm:$0xff] }
  0x3d   :  { %301 = vmatprep.subr.mxu0 %v76_v43  ;;  %371 = vmatpush1.msra.mxu1 %v141_v44  ;;  %v193_v4 = vld [vmem:[#allocation5 + $0x3f0] sm:$0xff]  ;;  %v127_v5 = vld [vmem:[#allocation5 + $0x1e0] sm:$0xff]  ;;  %v192_v6 = vld [vmem:[#allocation5 + $0x3e8] sm:$0xff] }
  0x3e   :  { %302 = vmatpush1.msra.mxu0 %v75_v45  ;;  %372 = vmatprep.subr.mxu1 %v140_v46  ;;  %v126_v7 = vld [vmem:[#allocation5 + $0x1d8] sm:$0xff]  ;;  %v191_v8 = vld [vmem:[#allocation5 + $0x3e0] sm:$0xff]  ;;  %v125_v9 = vld [vmem:[#allocation5 + $0x1d0] sm:$0xff] }
  0x3f   :  { %303 = vmatprep.subr.mxu0 %v74_v47  ;;  %373 = vmatpush1.msra.mxu1 %v139_v48  ;;  %v190_v10 = vld [vmem:[#allocation5 + $0x3d8] sm:$0xff]  ;;  %v124_v11 = vld [vmem:[#allocation5 + $0x1c8] sm:$0xff]  ;;  %v189_v12 = vld [vmem:[#allocation5 + $0x3d0] sm:$0xff] }
  0x40   :  { %304 = vmatpush1.msra.mxu0 %v73_v49  ;;  %374 = vmatprep.subr.mxu1 %v138_v50  ;;  %v123_v13 = vld [vmem:[#allocation5 + $0x1c0] sm:$0xff]  ;;  %v188_v14 = vld [vmem:[#allocation5 + $0x3c8] sm:$0xff]  ;;  %v122_v15 = vld [vmem:[#allocation5 + $0x1b8] sm:$0xff] }
  0x41   :  { %305 = vmatprep.subr.mxu0 %v72_v51  ;;  %375 = vmatpush1.msra.mxu1 %v137_v52  ;;  %v187_v16 = vld [vmem:[#allocation5 + $0x3c0] sm:$0xff]  ;;  %v121_v17 = vld [vmem:[#allocation5 + $0x1b0] sm:$0xff]  ;;  %v186_v18 = vld [vmem:[#allocation5 + $0x3b8] sm:$0xff] }
  0x42   :  { %306 = vmatpush1.msra.mxu0 %v71_v53  ;;  %376 = vmatprep.subr.mxu1 %v136_v54  ;;  %v120_v19 = vld [vmem:[#allocation5 + $0x1a8] sm:$0xff]  ;;  %v185_v20 = vld [vmem:[#allocation5 + $0x3b0] sm:$0xff]  ;;  %v119_v21 = vld [vmem:[#allocation5 + $0x1a0] sm:$0xff] }
  0x43   :  { %307 = vmatprep.subr.mxu0 %v70_v55  ;;  %377 = vmatpush1.msra.mxu1 %v135_v56  ;;  %v184_v22 = vld [vmem:[#allocation5 + $0x3a8] sm:$0xff]  ;;  %v118_v23 = vld [vmem:[#allocation5 + $0x198] sm:$0xff]  ;;  %v183_v24 = vld [vmem:[#allocation5 + $0x3a0] sm:$0xff] }
  0x44   :  { %308 = vmatpush1.msra.mxu0 %v69_v57  ;;  %378 = vmatprep.subr.mxu1 %v134_v58  ;;  %v117_v25 = vld [vmem:[#allocation5 + $0x190] sm:$0xff]  ;;  %v182_v26 = vld [vmem:[#allocation5 + $0x398] sm:$0xff]  ;;  %v116_v27 = vld [vmem:[#allocation5 + $0x188] sm:$0xff] }
  0x45   :  { %309 = vmatprep.subr.mxu0 %v68_v59  ;;  %379 = vmatpush1.msra.mxu1 %v133_v60  ;;  %v181_v28 = vld [vmem:[#allocation5 + $0x390] sm:$0xff]  ;;  %v115_v29 = vld [vmem:[#allocation5 + $0x180] sm:$0xff]  ;;  %v180_v30 = vld [vmem:[#allocation5 + $0x388] sm:$0xff] }
  0x46   :  { %310 = vmatpush1.msra.mxu0 %v67_v61  ;;  %380 = vmatprep.subr.mxu1 %v132_v62  ;;  %v114_v31 = vld [vmem:[#allocation5 + $0x178] sm:$0xff]  ;;  %v179_v32 = vld [vmem:[#allocation5 + $0x380] sm:$0xff]  ;;  %v113_v33 = vld [vmem:[#allocation5 + $0x170] sm:$0xff] }
  0x47   :  { %311 = vmatprep.subr.mxu0 %v130_v63  ;;  %381 = vmatpush1.msra.mxu1 %v131_v0  ;;  %v178_v34 = vld [vmem:[#allocation5 + $0x378] sm:$0xff]  ;;  %v112_v35 = vld [vmem:[#allocation5 + $0x168] sm:$0xff]  ;;  %v177_v36 = vld [vmem:[#allocation5 + $0x370] sm:$0xff] }
  0x48   :  { %312 = vmatpush2.msra.mxu0 %v129_v1  ;;  %382 = vmatprep.subr.mxu1 %v194_v2  ;;  %v111_v37 = vld [vmem:[#allocation5 + $0x160] sm:$0xff]  ;;  %v176_v38 = vld [vmem:[#allocation5 + $0x368] sm:$0xff]  ;;  %v110_v39 = vld [vmem:[#allocation5 + $0x158] sm:$0xff] }
  0x49   :  { %313 = vmatprep.subr.mxu0 %v128_v3  ;;  %383 = vmatpush2.msra.mxu1 %v193_v4  ;;  %v175_v40 = vld [vmem:[#allocation5 + $0x360] sm:$0xff]  ;;  %v109_v41 = vld [vmem:[#allocation5 + $0x150] sm:$0xff]  ;;  %v174_v42 = vld [vmem:[#allocation5 + $0x358] sm:$0xff] }
  0x4a   :  { %314 = vmatpush2.msra.mxu0 %v127_v5  ;;  %384 = vmatprep.subr.mxu1 %v192_v6  ;;  %v108_v43 = vld [vmem:[#allocation5 + $0x148] sm:$0xff]  ;;  %v173_v44 = vld [vmem:[#allocation5 + $0x350] sm:$0xff]  ;;  %v107_v45 = vld [vmem:[#allocation5 + $0x140] sm:$0xff] }
  0x4b   :  { %315 = vmatprep.subr.mxu0 %v126_v7  ;;  %385 = vmatpush2.msra.mxu1 %v191_v8  ;;  %v172_v46 = vld [vmem:[#allocation5 + $0x348] sm:$0xff]  ;;  %v106_v47 = vld [vmem:[#allocation5 + $0x138] sm:$0xff]  ;;  %v171_v48 = vld [vmem:[#allocation5 + $0x340] sm:$0xff] }
  0x4c   :  { %316 = vmatpush2.msra.mxu0 %v125_v9  ;;  %386 = vmatprep.subr.mxu1 %v190_v10  ;;  %v105_v49 = vld [vmem:[#allocation5 + $0x130] sm:$0xff]  ;;  %v170_v50 = vld [vmem:[#allocation5 + $0x338] sm:$0xff]  ;;  %v104_v51 = vld [vmem:[#allocation5 + $0x128] sm:$0xff] }
  0x4d   :  { %317 = vmatprep.subr.mxu0 %v124_v11  ;;  %387 = vmatpush2.msra.mxu1 %v189_v12  ;;  %v169_v52 = vld [vmem:[#allocation5 + $0x330] sm:$0xff]  ;;  %v103_v53 = vld [vmem:[#allocation5 + $0x120] sm:$0xff]  ;;  %v168_v54 = vld [vmem:[#allocation5 + $0x328] sm:$0xff] }
  0x4e   :  { %318 = vmatpush2.msra.mxu0 %v123_v13  ;;  %388 = vmatprep.subr.mxu1 %v188_v14  ;;  %v102_v55 = vld [vmem:[#allocation5 + $0x118] sm:$0xff]  ;;  %v167_v56 = vld [vmem:[#allocation5 + $0x320] sm:$0xff]  ;;  %v101_v57 = vld [vmem:[#allocation5 + $0x110] sm:$0xff] }
  0x4f   :  { %319 = vmatprep.subr.mxu0 %v122_v15  ;;  %389 = vmatpush2.msra.mxu1 %v187_v16  ;;  %v166_v58 = vld [vmem:[#allocation5 + $0x318] sm:$0xff]  ;;  %v100_v59 = vld [vmem:[#allocation5 + $0x108] sm:$0xff]  ;;  %v61_v60 = vld [vmem:[#allocation2 + $0x8] sm:$0xff] }
  0x50   :  { %320 = vmatpush2.msra.mxu0 %v121_v17  ;;  %390 = vmatprep.subr.mxu1 %v186_v18  ;;  %v99_v61 = vld [vmem:[#allocation5 + $0x100] sm:$0xff]  ;;  %v165_v62 = vld [vmem:[#allocation5 + $0x310] sm:$0xff]  ;;  %v60_v63 = vld [vmem:[#allocation2] sm:$0xff] }
  0x51   :  { %321 = vmatprep.subr.mxu0 %v120_v19  ;;  %391 = vmatpush2.msra.mxu1 %v185_v20  ;;  %v164_v0 = vld [vmem:[#allocation5 + $0x308] sm:$0xff]  ;;  %v226_v1 = vld [vmem:[#allocation5 + $0x4f8] sm:$0xff]  ;;  %v163_v2 = vld [vmem:[#allocation5 + $0x300] sm:$0xff] }
  0x52   :  { %322 = vmatpush2.msra.mxu0 %v119_v21  ;;  %392 = vmatprep.subr.mxu1 %v184_v22  ;;  %v63_v3 = vld [vmem:[#allocation2 + $0x18] sm:$0xff]  ;;  %v225_v4 = vld [vmem:[#allocation5 + $0x4f0] sm:$0xff]  ;;  %v62_v5 = vld [vmem:[#allocation2 + $0x10] sm:$0xff]  ;;  %v830_v22 = vmov 0.0  }
  0x53   :  { %323 = vmatprep.subr.mxu0 %v118_v23  ;;  %393 = vmatpush2.msra.mxu1 %v183_v24  ;;  %v224_v6 = vld [vmem:[#allocation5 + $0x4e8] sm:$0xff]  ;;  %v223_v7 = vld [vmem:[#allocation5 + $0x4e0] sm:$0xff]  ;;  %v262_v8 = vld [vmem:[#allocation5 + $0x618] sm:$0xff] }
  0x54   :  { %324 = vmatpush2.msra.mxu0 %v117_v25  ;;  %394 = vmatprep.subr.mxu1 %v182_v26  ;;  %v222_v9 = vld [vmem:[#allocation5 + $0x4d8] sm:$0xff]  ;;  %v261_v10 = vld [vmem:[#allocation5 + $0x610] sm:$0xff]  ;;  %v260_v12 = vld [vmem:[#allocation5 + $0x608] sm:$0xff] }
  0x55   :  { %325 = vmatprep.subr.mxu0 %v116_v27  ;;  %395 = vmatpush2.msra.mxu1 %v181_v28  ;;  %v221_v11 = vld [vmem:[#allocation5 + $0x4d0] sm:$0xff]  ;;  %v220_v13 = vld [vmem:[#allocation5 + $0x4c8] sm:$0xff]  ;;  %v219_v15 = vld [vmem:[#allocation5 + $0x4c0] sm:$0xff] }
  0x56   :  { %326 = vmatpush2.msra.mxu0 %v115_v29  ;;  %396 = vmatprep.subr.mxu1 %v180_v30  ;;  %v65_v14 = vld [vmem:[#allocation2 + $0x28] sm:$0xff]  ;;  %v259_v16 = vld [vmem:[#allocation5 + $0x600] sm:$0xff]  ;;  %v218_v17 = vld [vmem:[#allocation5 + $0x4b8] sm:$0xff] }
  0x57   :  { %327 = vmatprep.subr.mxu0 %v114_v31  ;;  %397 = vmatpush2.msra.mxu1 %v179_v32  ;;  %v217_v18 = vld [vmem:[#allocation5 + $0x4b0] sm:$0xff]  ;;  %v66_v19 = vld [vmem:[#allocation2 + $0x30] sm:$0xff]  ;;  %v216_v20 = vld [vmem:[#allocation5 + $0x4a8] sm:$0xff] }
  0x58   :  { %328 = vmatpush2.msra.mxu0 %v113_v33  ;;  %398 = vmatprep.subr.mxu1 %v178_v34  ;;  %v215_v21 = vld [vmem:[#allocation5 + $0x4a0] sm:$0xff]  ;;  %v214_v23 = vld [vmem:[#allocation5 + $0x498] sm:$0xff]  ;;  %v213_v24 = vld [vmem:[#allocation5 + $0x490] sm:$0xff] }
  0x59   :  { %329 = vmatprep.subr.mxu0 %v112_v35  ;;  %399 = vmatpush2.msra.mxu1 %v177_v36  ;;  %v212_v25 = vld [vmem:[#allocation5 + $0x488] sm:$0xff]  ;;  %v211_v26 = vld [vmem:[#allocation5 + $0x480] sm:$0xff]  ;;  %v210_v27 = vld [vmem:[#allocation5 + $0x478] sm:$0xff] }
  0x5a   :  { %330 = vmatpush2.msra.mxu0 %v111_v37  ;;  %400 = vmatprep.subr.mxu1 %v176_v38  ;;  %v209_v28 = vld [vmem:[#allocation5 + $0x470] sm:$0xff]  ;;  %v208_v29 = vld [vmem:[#allocation5 + $0x468] sm:$0xff]  ;;  %v207_v30 = vld [vmem:[#allocation5 + $0x460] sm:$0xff] }
  0x5b   :  { %331 = vmatprep.subr.mxu0 %v110_v39  ;;  %401 = vmatpush2.msra.mxu1 %v175_v40  ;;  %v206_v31 = vld [vmem:[#allocation5 + $0x458] sm:$0xff]  ;;  %v205_v32 = vld [vmem:[#allocation5 + $0x450] sm:$0xff]  ;;  %v204_v33 = vld [vmem:[#allocation5 + $0x448] sm:$0xff] }
  0x5c   :  { %332 = vmatpush2.msra.mxu0 %v109_v41  ;;  %402 = vmatprep.subr.mxu1 %v174_v42  ;;  %v203_v34 = vld [vmem:[#allocation5 + $0x440] sm:$0xff]  ;;  %v202_v35 = vld [vmem:[#allocation5 + $0x438] sm:$0xff]  ;;  %v201_v36 = vld [vmem:[#allocation5 + $0x430] sm:$0xff] }
  0x5d   :  { %333 = vmatprep.subr.mxu0 %v108_v43  ;;  %403 = vmatpush2.msra.mxu1 %v173_v44  ;;  %v200_v37 = vld [vmem:[#allocation5 + $0x428] sm:$0xff]  ;;  %v199_v38 = vld [vmem:[#allocation5 + $0x420] sm:$0xff]  ;;  %v198_v39 = vld [vmem:[#allocation5 + $0x418] sm:$0xff] }
  0x5e   :  { %334 = vmatpush2.msra.mxu0 %v107_v45  ;;  %404 = vmatprep.subr.mxu1 %v172_v46  ;;  %v197_v40 = vld [vmem:[#allocation5 + $0x410] sm:$0xff]  ;;  %v196_v41 = vld [vmem:[#allocation5 + $0x408] sm:$0xff]  ;;  %v195_v42 = vld [vmem:[#allocation5 + $0x400] sm:$0xff] }
  0x5f   :  { %335 = vmatprep.subr.mxu0 %v106_v47  ;;  %405 = vmatpush2.msra.mxu1 %v171_v48  ;;  %v258_v43 = vld [vmem:[#allocation5 + $0x5f8] sm:$0xff]  ;;  %v257_v44 = vld [vmem:[#allocation5 + $0x5f0] sm:$0xff]  ;;  %v256_v45 = vld [vmem:[#allocation5 + $0x5e8] sm:$0xff] }
  0x60   :  { %336 = vmatpush2.msra.mxu0 %v105_v49  ;;  %406 = vmatprep.subr.mxu1 %v170_v50  ;;  %v255_v46 = vld [vmem:[#allocation5 + $0x5e0] sm:$0xff]  ;;  %v254_v47 = vld [vmem:[#allocation5 + $0x5d8] sm:$0xff]  ;;  %v253_v48 = vld [vmem:[#allocation5 + $0x5d0] sm:$0xff] }
  0x61   :  { %337 = vmatprep.subr.mxu0 %v104_v51  ;;  %407 = vmatpush2.msra.mxu1 %v169_v52  ;;  %v252_v49 = vld [vmem:[#allocation5 + $0x5c8] sm:$0xff]  ;;  %v251_v50 = vld [vmem:[#allocation5 + $0x5c0] sm:$0xff]  ;;  %v250_v51 = vld [vmem:[#allocation5 + $0x5b8] sm:$0xff] }
  0x62   :  { %338 = vmatpush2.msra.mxu0 %v103_v53  ;;  %408 = vmatprep.subr.mxu1 %v168_v54  ;;  %v249_v52 = vld [vmem:[#allocation5 + $0x5b0] sm:$0xff]  ;;  %v248_v53 = vld [vmem:[#allocation5 + $0x5a8] sm:$0xff]  ;;  %v247_v54 = vld [vmem:[#allocation5 + $0x5a0] sm:$0xff] }
  0x63   :  { %339 = vmatprep.subr.mxu0 %v102_v55  ;;  %409 = vmatpush2.msra.mxu1 %v167_v56  ;;  %v246_v55 = vld [vmem:[#allocation5 + $0x598] sm:$0xff]  ;;  %v245_v56 = vld [vmem:[#allocation5 + $0x590] sm:$0xff] }
  0x64   :  { %340 = vmatpush2.msra.mxu0 %v101_v57  ;;  %410 = vmatprep.subr.mxu1 %v166_v58  ;;  %v244_v57 = vld [vmem:[#allocation5 + $0x588] sm:$0xff]  ;;  %v243_v58 = vld [vmem:[#allocation5 + $0x580] sm:$0xff] }
  0x65   :  { %341 = vmatprep.subr.mxu0 %v100_v59  ;;  %343 = vmatprep.mubr.f32.mxu0 %v61_v60  ;;  %v242_v59 = vld [vmem:[#allocation5 + $0x578] sm:$0xff]  ;;  %v241_v60 = vld [vmem:[#allocation5 + $0x570] sm:$0xff] }
  0x66   :  { %342 = vmatpush2.msra.mxu0 %v99_v61  ;;  %411 = vmatpush2.msra.mxu1 %v165_v62  ;;  %v240_v61 = vld [vmem:[#allocation5 + $0x568] sm:$0xff]  ;;  %v239_v62 = vld [vmem:[#allocation5 + $0x560] sm:$0xff] }
  0x67   :  { %344 = vmatmul.mubr.f32.vlgmr.msra.gmra.mxu0 %v60_v63  ;;  %412 = vmatprep.subr.mxu1 %v164_v0  ;;  %v238_v63 = vld [vmem:[#allocation5 + $0x558] sm:$0xff]  ;;  %v237_v0 = vld [vmem:[#allocation5 + $0x550] sm:$0xff] }
  0x68   :  { %421 = vmatprep.subr.mxu0 %v226_v1  ;;  %413 = vmatpush2.msra.mxu1 %v163_v2  ;;  %v236_v1 = vld [vmem:[#allocation5 + $0x548] sm:$0xff]  ;;  %v235_v2 = vld [vmem:[#allocation5 + $0x540] sm:$0xff] }
  0x69   :  { %414 = vmatprep.mubr.f32.mxu1 %v63_v3  ;;  %422 = vmatpush1.msra.mxu0 %v225_v4  ;;  %v234_v3 = vld [vmem:[#allocation5 + $0x538] sm:$0xff]  ;;  %v233_v4 = vld [vmem:[#allocation5 + $0x530] sm:$0xff] }
  0x6a   :  { %415 = vmatmul.mubr.f32.vlgmr.msra.gmra.mxu1 %v62_v5  ;;  %423 = vmatprep.subr.mxu0 %v224_v6  ;;  %v232_v5 = vld [vmem:[#allocation5 + $0x528] sm:$0xff]  ;;  %v231_v6 = vld [vmem:[#allocation5 + $0x520] sm:$0xff] }
  0x6b   :  { %424 = vmatpush1.msra.mxu0 %v223_v7  ;;  %520 = vmatprep.subr.mxu1 %v262_v8  ;;  %v230_v7 = vld [vmem:[#allocation5 + $0x518] sm:$0xff]  ;;  %v229_v8 = vld [vmem:[#allocation5 + $0x510] sm:$0xff] }
  0x6c   :  { %425 = vmatprep.subr.mxu0 %v222_v9  ;;  %521 = vmatpush1.msra.mxu1 %v261_v10  ;;  %v228_v9 = vld [vmem:[#allocation5 + $0x508] sm:$0xff]  ;;  %v227_v10 = vld [vmem:[#allocation5 + $0x500] sm:$0xff] }
  0x6d   :  { %426 = vmatpush1.msra.mxu0 %v221_v11  ;;  %522 = vmatprep.subr.mxu1 %v260_v12  ;;  %v64_v11 = vld [vmem:[#allocation2 + $0x20] sm:$0xff]  ;;  %v596_v12 = vld [vmem:[#allocation7 + $0xf8] sm:$0xff] }
  0x6e   :  { %427 = vmatprep.subr.mxu0 %v220_v13  ;;  %485 = vmatprep.mubr.f32.mxu0 %v65_v14  ;;  %v580_v13 = vld [vmem:[#allocation7 + $0x78] sm:$0xff]  ;;  %v595_v14 = vld [vmem:[#allocation7 + $0xf0] sm:$0xff] }
  0x6f   :  { %428 = vmatpush1.msra.mxu0 %v219_v15  ;;  %523 = vmatpush1.msra.mxu1 %v259_v16  ;;  %v579_v15 = vld [vmem:[#allocation7 + $0x70] sm:$0xff]  ;;  %v594_v16 = vld [vmem:[#allocation7 + $0xe8] sm:$0xff] }
  0x70   :  { %429 = vmatprep.subr.mxu0 %v218_v17  ;;  %556 = vmatprep.mubr.f32.mxu1 %v830_v22  ;;  %v578_v17 = vld [vmem:[#allocation7 + $0x68] sm:$0xff]  ;;  %v591_v22 = vld [vmem:[#allocation7 + $0xd0] sm:$0xff] }
  0x71   :  { %430 = vmatpush1.msra.mxu0 %v217_v18  ;;  %691 = vmatmul.mubr.msk.f32.vlgmr.msra.gmra.mxu1 %vm275_vm0, %v66_v19  ;;  %v593_v18 = vld [vmem:[#allocation7 + $0xe0] sm:$0xff] }
  0x72   :  { %431 = vmatprep.subr.mxu0 %v216_v20  ;;  %693 = vmatprep.subr.mxu1 %v596_v12  ;;  %v577_v19 = vld [vmem:[#allocation7 + $0x60] sm:$0xff]  ;;  %v592_v20 = vld [vmem:[#allocation7 + $0xd8] sm:$0xff] }
  0x73   :  { %432 = vmatpush1.msra.mxu0 %v215_v21  ;;  %694 = vmatpush3.msra.mxu1 %v580_v13  ;;  %v576_v21 = vld [vmem:[#allocation7 + $0x58] sm:$0xff] }
  0x74   :  { %433 = vmatprep.subr.mxu0 %v214_v23  ;;  %695 = vmatprep.subr.mxu1 %v595_v14  ;;  %v575_v23 = vld [vmem:[#allocation7 + $0x50] sm:$0xff] }
  0x75   :  { %434 = vmatpush1.msra.mxu0 %v213_v24  ;;  %696 = vmatpush3.msra.mxu1 %v579_v15  ;;  %v590_v24 = vld [vmem:[#allocation7 + $0xc8] sm:$0xff] }
  0x76   :  { %435 = vmatprep.subr.mxu0 %v212_v25  ;;  %697 = vmatprep.subr.mxu1 %v594_v16  ;;  %v574_v25 = vld [vmem:[#allocation7 + $0x48] sm:$0xff] }
  0x77   :  { %436 = vmatpush1.msra.mxu0 %v211_v26  ;;  %698 = vmatpush3.msra.mxu1 %v578_v17  ;;  %v589_v26 = vld [vmem:[#allocation7 + $0xc0] sm:$0xff] }
  0x78   :  { %437 = vmatprep.subr.mxu0 %v210_v27  ;;  %699 = vmatprep.subr.mxu1 %v593_v18  ;;  %v573_v27 = vld [vmem:[#allocation7 + $0x40] sm:$0xff] }
  0x79   :  { %438 = vmatpush1.msra.mxu0 %v209_v28  ;;  %700 = vmatpush3.msra.mxu1 %v577_v19  ;;  %v588_v28 = vld [vmem:[#allocation7 + $0xb8] sm:$0xff] }
  0x7a   :  { %439 = vmatprep.subr.mxu0 %v208_v29  ;;  %701 = vmatprep.subr.mxu1 %v592_v20  ;;  %v572_v29 = vld [vmem:[#allocation7 + $0x38] sm:$0xff] }
  0x7b   :  { %440 = vmatpush1.msra.mxu0 %v207_v30  ;;  %702 = vmatpush3.msra.mxu1 %v576_v21  ;;  %v587_v30 = vld [vmem:[#allocation7 + $0xb0] sm:$0xff] }
  0x7c   :  { %441 = vmatprep.subr.mxu0 %v206_v31  ;;  %703 = vmatprep.subr.mxu1 %v591_v22  ;;  %v571_v31 = vld [vmem:[#allocation7 + $0x30] sm:$0xff] }
  0x7d   :  { %442 = vmatpush1.msra.mxu0 %v205_v32  ;;  %704 = vmatpush3.msra.mxu1 %v575_v23  ;;  %v586_v32 = vld [vmem:[#allocation7 + $0xa8] sm:$0xff] }
  0x7e   :  { %443 = vmatprep.subr.mxu0 %v204_v33  ;;  %705 = vmatprep.subr.mxu1 %v590_v24  ;;  %v570_v33 = vld [vmem:[#allocation7 + $0x28] sm:$0xff] }
  0x7f   :  { %444 = vmatpush1.msra.mxu0 %v203_v34  ;;  %706 = vmatpush3.msra.mxu1 %v574_v25  ;;  %v585_v34 = vld [vmem:[#allocation7 + $0xa0] sm:$0xff] }
  0x80   :  { %445 = vmatprep.subr.mxu0 %v202_v35  ;;  %707 = vmatprep.subr.mxu1 %v589_v26  ;;  %v569_v35 = vld [vmem:[#allocation7 + $0x20] sm:$0xff] }
  0x81   :  { %446 = vmatpush1.msra.mxu0 %v201_v36  ;;  %708 = vmatpush3.msra.mxu1 %v573_v27  ;;  %v584_v36 = vld [vmem:[#allocation7 + $0x98] sm:$0xff] }
  0x82   :  { %447 = vmatprep.subr.mxu0 %v200_v37  ;;  %709 = vmatprep.subr.mxu1 %v588_v28  ;;  %v568_v37 = vld [vmem:[#allocation7 + $0x18] sm:$0xff] }
  0x83   :  { %448 = vmatpush1.msra.mxu0 %v199_v38  ;;  %710 = vmatpush3.msra.mxu1 %v572_v29  ;;  %v583_v38 = vld [vmem:[#allocation7 + $0x90] sm:$0xff] }
  0x84   :  { %449 = vmatprep.subr.mxu0 %v198_v39  ;;  %711 = vmatprep.subr.mxu1 %v587_v30  ;;  %v567_v39 = vld [vmem:[#allocation7 + $0x10] sm:$0xff] }
  0x85   :  { %450 = vmatpush1.msra.mxu0 %v197_v40  ;;  %712 = vmatpush3.msra.mxu1 %v571_v31  ;;  %v582_v40 = vld [vmem:[#allocation7 + $0x88] sm:$0xff] }
  0x86   :  { %451 = vmatprep.subr.mxu0 %v196_v41  ;;  %713 = vmatprep.subr.mxu1 %v586_v32  ;;  %v566_v41 = vld [vmem:[#allocation7 + $0x8] sm:$0xff] }
  0x87   :  { %452 = vmatpush1.msra.mxu0 %v195_v42  ;;  %714 = vmatpush3.msra.mxu1 %v570_v33  ;;  %v581_v42 = vld [vmem:[#allocation7 + $0x80] sm:$0xff] }
  0x88   :  { %453 = vmatprep.subr.mxu0 %v258_v43  ;;  %715 = vmatprep.subr.mxu1 %v585_v34  ;;  %v565_v43 = vld [vmem:[#allocation7] sm:$0xff] }
  0x89   :  { %454 = vmatpush2.msra.mxu0 %v257_v44  ;;  %716 = vmatpush3.msra.mxu1 %v569_v35  ;;  %v265_v44 = vlaneseq }
  0x8a   :  { %455 = vmatprep.subr.mxu0 %v256_v45  ;;  %717 = vmatprep.subr.mxu1 %v584_v36 }
  0x8b   :  { %456 = vmatpush2.msra.mxu0 %v255_v46  ;;  %718 = vmatpush3.msra.mxu1 %v568_v37  ;;  %v266_v45 = vshrl.u32 %v265_v44, 7 }
  0x8c   :  { %457 = vmatprep.subr.mxu0 %v254_v47  ;;  %719 = vmatprep.subr.mxu1 %v583_v38  ;;  %v263_v47 = vld [vmem:[%s882_s2] sm:$0x3] }
  0x8d   :  { %458 = vmatpush2.msra.mxu0 %v253_v48  ;;  %720 = vmatpush3.msra.mxu1 %v567_v39  ;;  %v267_v46 = vsub.s32 0, %v266_v45  ;;  %v271_v48 = vsub.s32 1, %v266_v45 }
  0x8e   :  { %459 = vmatprep.subr.mxu0 %v252_v49  ;;  %721 = vmatprep.subr.mxu1 %v582_v40 }
  0x8f   :  { %460 = vmatpush2.msra.mxu0 %v251_v50  ;;  %722 = vmatpush3.msra.mxu1 %v566_v41  ;;  %v268_v50 = vrot.slane %v263_v47, %v267_v46 }
  0x90   :  { %461 = vmatprep.subr.mxu0 %v250_v51  ;;  %723 = vmatprep.subr.mxu1 %v581_v42  ;;  %v272_v51 = vrot.slane %v263_v47, %v271_v48 }
  0x91   :  { %462 = vmatpush2.msra.mxu0 %v249_v52  ;;  %724 = vmatpush3.msra.mxu1 %v565_v43 }
  0x92   :  { %463 = vmatprep.subr.mxu0 %v248_v53 }
  0x93   :  { %464 = vmatpush2.msra.mxu0 %v247_v54 }
  0x94   :  { %465 = vmatprep.subr.mxu0 %v246_v55 }
  0x95   :  { %466 = vmatpush2.msra.mxu0 %v245_v56 }
  0x96   :  { %467 = vmatprep.subr.mxu0 %v244_v57 }
  0x97   :  { %468 = vmatpush2.msra.mxu0 %v243_v58 }
  0x98   :  { %469 = vmatprep.subr.mxu0 %v242_v59 }
  0x99   :  { %470 = vmatpush2.msra.mxu0 %v241_v60 }
  0x9a   :  { %471 = vmatprep.subr.mxu0 %v240_v61 }
  0x9b   :  { %472 = vmatpush2.msra.mxu0 %v239_v62 }
  0x9c   :  { %473 = vmatprep.subr.mxu0 %v238_v63 }
  0x9d   :  { %474 = vmatpush2.msra.mxu0 %v237_v0 }
  0x9e   :  { %475 = vmatprep.subr.mxu0 %v236_v1 }
  0x9f   :  { %476 = vmatpush2.msra.mxu0 %v235_v2 }
  0xa0   :  { %477 = vmatprep.subr.mxu0 %v234_v3 }
  0xa1   :  { %478 = vmatpush2.msra.mxu0 %v233_v4 }
  0xa2   :  { %479 = vmatprep.subr.mxu0 %v232_v5 }
  0xa3   :  { %480 = vmatpush2.msra.mxu0 %v231_v6  ;;  %v692_v6 = vld [vmem:[%s884_s4] ss:$0 sm:$0xff] }
  0xa4   :  { %481 = vmatprep.subr.mxu0 %v230_v7 }
  0xa5   :  { %482 = vmatpush2.msra.mxu0 %v229_v8 }
  0xa6   :  { %483 = vmatprep.subr.mxu0 %v228_v9 }
  0xa7   :  { %484 = vmatpush2.msra.mxu0 %v227_v10 }
  0xa8   :  { %486 = vmatmul.mubr.f32.vlgmr.msra.gmra.mxu0 %v64_v11 }
 0x127   :  { %v345_v49 = vpop.f32.mrf.mxu0 }
 0x128   :  { %v346_v54 = vadd.f32 %v345_v49, %v268_v50 }
 0x129   :  { %v347_v52 = vpop.f32.mrf.mxu0 }
 0x12a   :  { %v416_v53 = vpop.f32.mrf.mxu1  ;;  %v348_v55 = vadd.f32 %v347_v52, %v272_v51 }
 0x12b   :  { %v417_v57 = vadd.f32 %v416_v53, %v346_v54 }
 0x12c   :  { %v418_v56 = vpop.f32.mrf.mxu1 }
 0x12d   :  { %v419_v60 = vadd.f32 %v418_v56, %v348_v55 }
 0x131   :  { %v558_v59 = vpop.f32.mrf.mxu1 }
 0x133   :  { %v560_v1 = vpop.f32.mrf.mxu1 }
 0x168   :  { %v487_v58 = vpop.f32.mrf.mxu0 }
 0x169   :  { %v488_v61 = vadd.f32 %v487_v58, %v417_v57 }
 0x16a   :  { %v489_v62 = vpop.f32.mrf.mxu0 }
 0x16b   :  { %v490_v63 = vadd.f32 %v489_v62, %v419_v60  ;;  %v559_v0 = vadd.f32 %v558_v59, %v488_v61 }
 0x16d   :  { %v561_v2 = vadd.f32 %v560_v1, %v490_v63  ;;  %v563_v4 = vmax.f32 %v559_v0, 0.0 }
 0x16f   :  { %v564_v3 = vmax.f32 %v561_v2, 0.0 }
 0x171   :  { %668 = vmatprep.mubr.f32.mxu1 %v564_v3 }
 0x172   :  { %669 = vmatmul.mubr.f32.vlgmr.msra.gmra.mxu1 %v563_v4 }
 0x232   :  { %v725_v5 = vpop.f32.mrf.mxu1 }
 0x234   :  { %v726_v7 = vpop.f32.mrf.mxu1 }
 0x235   :  { %v727_v8 = vadd.f32 %v726_v7, %v725_v5 }
 0x237   :  { %v671_v9 = vadd.f32 %v727_v8, %v692_v6 }
 0x239   :  { %674 = vst [vmem:[#allocation8] sm:$0xff] %v671_v9 }
 0x23a   :  { %808 = shalt.err (!%p805_p5)
}
 0x23b   :  { %684 = dma.vmem_to_hbm [thread:$0]  %s682_s13, 128, %s885_s5, [#allocation4]  }
 0x23c   :  { %821 = dma.done.wait [#allocation4], 128  }
 0x23d   :  { %822 = vsyncadd [#allocation4], 4294967168 }
 0x23e   :  { %688 = vsyncpa [#allocation3], 1 }
 0x23f   :  { %689 = vsyncpa [#allocation6], 1 }
 0x240   :  { %690 = vsyncpa [#allocation4], 1 }

</bundles_post_ra>
